<compile_context>
chip_gen: v6e
topology: v6e:2x2x1
jax: 0.10.0
libtpu: 0.0.40
codegen_flags: <defaults>
</compile_context>

<pallas_src>
import jax
import jax.numpy as jnp
from jax.experimental import pallas as pl
from jax.experimental.pallas import tpu as pltpu

# ----------------------------- configuration -------------------------------
B = 2                 # batch
N = 16                # tokens (sequence length seen by PreNorm)
DIM = 32              # model dim (LayerNorm normalized_shape)
HEADS = 4
DIM_HEAD = 8
INNER = HEADS * DIM_HEAD      # 32
MLP_DIM = 64
SCALE = DIM_HEAD ** -0.5
EPS = 1e-5                    # PyTorch nn.LayerNorm default eps


# ------------------------------ math helpers --------------------------------
def _layernorm(x, g, b):
    mu = jnp.mean(x, axis=-1, keepdims=True)
    var = jnp.mean((x - mu) ** 2, axis=-1, keepdims=True)
    return (x - mu) * jax.lax.rsqrt(var + EPS) * g + b


def _erf_poly(x):
    # Abramowitz & Stegun 7.1.26, |err| < 1.5e-7.  Only exp/mul/add/where, so it is
    # guaranteed to lower in Mosaic (used for the exact-erf form of nn.GELU).
    p = 0.3275911
    a1, a2, a3, a4, a5 = 0.254829592, -0.284496736, 1.421413741, -1.453152027, 1.061405429
    s = jnp.where(x >= 0.0, 1.0, -1.0)
    ax = jnp.abs(x)
    t = 1.0 / (1.0 + p * ax)
    poly = ((((a5 * t + a4) * t + a3) * t + a2) * t + a1) * t
    return s * (1.0 - poly * jnp.exp(-ax * ax))


def _gelu_exact(x, erf=_erf_poly):
    # PyTorch nn.GELU() default is the exact (erf) form.
    return 0.5 * x * (1.0 + erf(x * (2.0 ** -0.5)))


# --------------------- kernel 1: PreNorm(dim, Attention) --------------------
def prenorm_attn_kernel(x_ref, g_ref, b_ref, w_qkv_ref, w_out_ref, b_out_ref, o_ref):
    # LayerNorm (the PreNorm part)
    xn = _layernorm(x_ref[0], g_ref[...], b_ref[...])                     # (N, DIM)

    # fused QKV projection: one (N, DIM) @ (DIM, 3*INNER) MXU push (bias=False in torch)
    qkv = jnp.dot(xn, w_qkv_ref[...], preferred_element_type=jnp.float32)  # (N, 3*INNER)

    def heads_of(base, _qkv=qkv):
        # (HEADS, N, DIM_HEAD): static lane slices stacked along a new leading axis
        return jnp.stack(
            [_qkv[:, base + h * DIM_HEAD: base + (h + 1) * DIM_HEAD]
             for h in range(HEADS)], axis=0)

    q = heads_of(0)
    k = heads_of(INNER)
    v = heads_of(2 * INNER)

    # head-batched scores + single softmax over (HEADS, N, N)
    dots = jnp.einsum("hqd,hkd->hqk", q, k,
                      preferred_element_type=jnp.float32) * SCALE
    dots = dots - jnp.max(dots, axis=-1, keepdims=True)
    e = jnp.exp(dots)
    attn = e * pl.reciprocal(jnp.sum(e, axis=-1, keepdims=True), approx=True)
    o = jnp.einsum("hqk,hkd->hqd", attn, v,
                   preferred_element_type=jnp.float32)                      # (H, N, E)

    # output projection: batched matmul + reduction over heads (no lane concat)
    per_head = jnp.einsum("hqe,hed->hqd", o, w_out_ref[...],
                          preferred_element_type=jnp.float32)               # (H, N, DIM)
    out = jnp.sum(per_head, axis=0) + b_out_ref[...]
    o_ref[0] = out.astype(o_ref.dtype)


# -------------------- kernel 2: PreNorm(dim, FeedForward) -------------------
def prenorm_ff_kernel(x_ref, g_ref, b_ref, w1_ref, b1_ref, w2_ref, b2_ref, o_ref):
    xn = _layernorm(x_ref[0], g_ref[...], b_ref[...])                      # (N, DIM)
    h = jnp.dot(xn, w1_ref[...], preferred_element_type=jnp.float32) + b1_ref[...]
    h = _gelu_exact(h)
    out = jnp.dot(h, w2_ref[...], preferred_element_type=jnp.float32) + b2_ref[...]
    o_ref[0] = out.astype(o_ref.dtype)


# ------------------------------ pallas_call wrappers -------------------------
def _full_spec(a):
    # whole array as one VMEM-resident block, identical for every grid step
    return pl.BlockSpec(a.shape, lambda b, nd=a.ndim: (0,) * nd)


def _run_prenorm(kernel, x, weights):
    return pl.pallas_call(
        kernel,
        out_shape=jax.ShapeDtypeStruct((B, N, DIM), jnp.float32),
        grid=(B,),
        in_specs=[pl.BlockSpec((1, N, DIM), lambda b: (b, 0, 0))]
                 + [_full_spec(w) for w in weights],
        out_specs=pl.BlockSpec((1, N, DIM), lambda b: (b, 0, 0)),
        compiler_params=pltpu.CompilerParams(dimension_semantics=("parallel",)),
    )(x, *weights)


def prenorm_attention(x, p):
    return _run_prenorm(prenorm_attn_kernel, x,
                        [p["g"], p["b"], p["w_qkv"], p["w_out"], p["b_out"]])


def prenorm_feedforward(x, p):
    return _run_prenorm(prenorm_ff_kernel, x,
                        [p["g"], p["b"], p["w_ff1"], p["b_ff1"], p["w_ff2"], p["b_ff2"]])


# ------------------------------ pure-JAX references --------------------------
def prenorm_attention_ref(x, p):
    xn = _layernorm(x, p["g"], p["b"])
    qkv = xn @ p["w_qkv"]                                                  # (B, N, 3*INNER)
    q, k, v = jnp.split(qkv, 3, axis=-1)

    def split_heads(t):                                                    # -> (B, H, N, E)
        return t.reshape(x.shape[0], N, HEADS, DIM_HEAD).transpose(0, 2, 1, 3)

    q, k, v = map(split_heads, (q, k, v))
    dots = jnp.einsum("bhie,bhje->bhij", q, k) * SCALE
    attn = jax.nn.softmax(dots, axis=-1)
    o = jnp.einsum("bhij,bhje->bhie", attn, v)                             # (B, H, N, E)
    return jnp.einsum("bhie,hed->bid", o, p["w_out"]) + p["b_out"]


def prenorm_feedforward_ref(x, p):
    xn = _layernorm(x, p["g"], p["b"])
    h = _gelu_exact(xn @ p["w_ff1"] + p["b_ff1"], erf=jax.lax.erf)
    return h @ p["w_ff2"] + p["b_ff2"]


# ------------------------------ parameter init -------------------------------
def init_params(key):
    keys = iter(jax.random.split(key, 16))

    def nrm(shape, scale=0.1):
        return (scale * jax.random.normal(next(keys), shape)).astype(jnp.float32)

    return {
        # nn.LayerNorm(dim)
        "g": jnp.ones((1, DIM), jnp.float32),
        "b": jnp.zeros((1, DIM), jnp.float32),
        # Attention(dim, heads, dim_head): to_qkv (bias=False), to_out Linear(+bias)
        "w_qkv": nrm((DIM, 3 * INNER)),          # [Q_h0..Q_h3 | K_h0..K_h3 | V_h0..V_h3]
        "w_out": nrm((HEADS, DIM_HEAD, DIM)),    # per-head slabs of the (INNER, DIM) matrix
        "b_out": nrm((1, DIM), 0.02),
        # FeedForward(dim, mlp_dim)
        "w_ff1": nrm((DIM, MLP_DIM)),
        "b_ff1": nrm((1, MLP_DIM), 0.02),
        "w_ff2": nrm((MLP_DIM, DIM)),
        "b_ff2": nrm((1, DIM), 0.02),
    }


# ------------------------------ main -----------------------------------------
if __name__ == "__main__":
    key = jax.random.PRNGKey(0)
    pkey, dkey = jax.random.split(key)
    params = init_params(pkey)

    x = jax.random.normal(dkey, (B, N, DIM), dtype=jnp.float32)

    # PreNorm(dim, Attention)
    out_attn = jax.block_until_ready(prenorm_attention(x, params))
    ref_attn = jax.block_until_ready(prenorm_attention_ref(x, params))
    assert out_attn.shape == (B, N, DIM)
    diff_attn = float(jnp.max(jnp.abs(out_attn - ref_attn)))
    assert diff_attn < 5e-2, f"PreNorm(Attention) mismatch: {diff_attn}"

    # PreNorm(dim, FeedForward)
    out_ff = jax.block_until_ready(prenorm_feedforward(x, params))
    ref_ff = jax.block_until_ready(prenorm_feedforward_ref(x, params))
    assert out_ff.shape == (B, N, DIM)
    diff_ff = float(jnp.max(jnp.abs(out_ff - ref_ff)))
    assert diff_ff < 5e-2, f"PreNorm(FeedForward) mismatch: {diff_ff}"

    print("KERNEL_OK")
</pallas_src>

<mosaic_0001>
module attributes {stable_mosaic.version = 11 : i64} {
  func.func @prenorm_attn_kernel(%arg0: i32, %arg1: memref<1x16x32xf32, #tpu.memory_space<vmem>>, %arg2: memref<1x32xf32, #tpu.memory_space<vmem>>, %arg3: memref<1x32xf32, #tpu.memory_space<vmem>>, %arg4: memref<32x96xf32, #tpu.memory_space<vmem>>, %arg5: memref<4x8x32xf32, #tpu.memory_space<vmem>>, %arg6: memref<1x32xf32, #tpu.memory_space<vmem>>, %arg7: memref<1x16x32xf32, #tpu.memory_space<vmem>>) attributes {dimension_semantics = [#tpu.dimension_semantics<parallel>], iteration_bounds = array<i64: 2>, scalar_prefetch = 0 : i64, scratch_operands = 0 : i64, tpu.core_type = #tpu.core_type<tc>, window_params = [{transform_indices = @transform_0, window_bounds = array<i64: 1, 16, 32>}, {pipeline_mode = #tpu.pipeline_mode<synchronous>, transform_indices = @transform_1, window_bounds = array<i64: 1, 32>}, {pipeline_mode = #tpu.pipeline_mode<synchronous>, transform_indices = @transform_2, window_bounds = array<i64: 1, 32>}, {pipeline_mode = #tpu.pipeline_mode<synchronous>, transform_indices = @transform_3, window_bounds = array<i64: 32, 96>}, {pipeline_mode = #tpu.pipeline_mode<synchronous>, transform_indices = @transform_4, window_bounds = array<i64: 4, 8, 32>}, {pipeline_mode = #tpu.pipeline_mode<synchronous>, transform_indices = @transform_5, window_bounds = array<i64: 1, 32>}, {transform_indices = @transform_6, window_bounds = array<i64: 1, 16, 32>}]} {
    %c0 = arith.constant 0 : index
    %c0_0 = arith.constant 0 : index
    %c0_1 = arith.constant 0 : index
    %0 = vector.load %arg1[%c0, %c0_0, %c0_1] : memref<1x16x32xf32, #tpu.memory_space<vmem>>, vector<1x16x32xf32>
    %1 = vector.shape_cast %0 : vector<1x16x32xf32> to vector<16x32xf32>
    %c0_2 = arith.constant 0 : index
    %c0_3 = arith.constant 0 : index
    %2 = vector.load %arg2[%c0_2, %c0_3] : memref<1x32xf32, #tpu.memory_space<vmem>>, vector<1x32xf32>
    %c0_4 = arith.constant 0 : index
    %c0_5 = arith.constant 0 : index
    %3 = vector.load %arg3[%c0_4, %c0_5] : memref<1x32xf32, #tpu.memory_space<vmem>>, vector<1x32xf32>
    %cst = arith.constant dense<0.000000e+00> : vector<16xf32>
    %4 = vector.multi_reduction <add>, %1, %cst [1] : vector<16x32xf32> to vector<16xf32>
    %5 = vector.shape_cast %4 : vector<16xf32> to vector<16x1xf32>
    %cst_6 = arith.constant 3.200000e+01 : f32
    %6 = vector.broadcast %cst_6 : f32 to vector<16x1xf32>
    %7 = arith.divf %5, %6 : vector<16x1xf32>
    %8 = vector.broadcast %7 : vector<16x1xf32> to vector<16x32xf32>
    %9 = arith.subf %1, %8 : vector<16x32xf32>
    %10 = arith.mulf %9, %9 : vector<16x32xf32>
    %cst_7 = arith.constant dense<0.000000e+00> : vector<16xf32>
    %11 = vector.multi_reduction <add>, %10, %cst_7 [1] : vector<16x32xf32> to vector<16xf32>
    %12 = vector.shape_cast %11 : vector<16xf32> to vector<16x1xf32>
    %cst_8 = arith.constant 3.200000e+01 : f32
    %13 = vector.broadcast %cst_8 : f32 to vector<16x1xf32>
    %14 = arith.divf %12, %13 : vector<16x1xf32>
    %15 = vector.broadcast %7 : vector<16x1xf32> to vector<16x32xf32>
    %16 = arith.subf %1, %15 : vector<16x32xf32>
    %cst_9 = arith.constant 9.99999974E-6 : f32
    %17 = vector.broadcast %cst_9 : f32 to vector<16x1xf32>
    %18 = arith.addf %14, %17 : vector<16x1xf32>
    %19 = math.rsqrt %18 : vector<16x1xf32>
    %20 = vector.broadcast %19 : vector<16x1xf32> to vector<16x32xf32>
    %21 = arith.mulf %16, %20 : vector<16x32xf32>
    %22 = vector.broadcast %2 : vector<1x32xf32> to vector<16x32xf32>
    %23 = arith.mulf %21, %22 : vector<16x32xf32>
    %24 = vector.broadcast %3 : vector<1x32xf32> to vector<16x32xf32>
    %25 = arith.addf %23, %24 : vector<16x32xf32>
    %c0_10 = arith.constant 0 : index
    %c0_11 = arith.constant 0 : index
    %26 = vector.load %arg4[%c0_10, %c0_11] : memref<32x96xf32, #tpu.memory_space<vmem>>, vector<32x96xf32>
    %cst_12 = arith.constant dense<0.000000e+00> : vector<16x96xf32>
    %27 = tpu.matmul %25, %26, %cst_12 {dimension_numbers = #tpu.dot_dimension_numbers<[1], [0], [0], [1], [0, 0, 1, 1], [], []>} : vector<16x32xf32>, vector<32x96xf32>, vector<16x96xf32> -> vector<16x96xf32>
    %28 = vector.extract_strided_slice %27 {offsets = [0, 0], sizes = [16, 8], strides = [1, 1]} : vector<16x96xf32> to vector<16x8xf32>
    %29 = vector.extract_strided_slice %27 {offsets = [0, 8], sizes = [16, 8], strides = [1, 1]} : vector<16x96xf32> to vector<16x8xf32>
    %30 = vector.extract_strided_slice %27 {offsets = [0, 16], sizes = [16, 8], strides = [1, 1]} : vector<16x96xf32> to vector<16x8xf32>
    %31 = vector.extract_strided_slice %27 {offsets = [0, 24], sizes = [16, 8], strides = [1, 1]} : vector<16x96xf32> to vector<16x8xf32>
    %32 = vector.shape_cast %28 : vector<16x8xf32> to vector<1x16x8xf32>
    %33 = vector.shape_cast %29 : vector<16x8xf32> to vector<1x16x8xf32>
    %34 = vector.shape_cast %30 : vector<16x8xf32> to vector<1x16x8xf32>
    %35 = vector.shape_cast %31 : vector<16x8xf32> to vector<1x16x8xf32>
    %36 = tpu.concatenate %32, %33, %34, %35 in 0 : vector<1x16x8xf32>, vector<1x16x8xf32>, vector<1x16x8xf32>, vector<1x16x8xf32> -> vector<4x16x8xf32>
    %37 = vector.extract_strided_slice %27 {offsets = [0, 32], sizes = [16, 8], strides = [1, 1]} : vector<16x96xf32> to vector<16x8xf32>
    %38 = vector.extract_strided_slice %27 {offsets = [0, 40], sizes = [16, 8], strides = [1, 1]} : vector<16x96xf32> to vector<16x8xf32>
    %39 = vector.extract_strided_slice %27 {offsets = [0, 48], sizes = [16, 8], strides = [1, 1]} : vector<16x96xf32> to vector<16x8xf32>
    %40 = vector.extract_strided_slice %27 {offsets = [0, 56], sizes = [16, 8], strides = [1, 1]} : vector<16x96xf32> to vector<16x8xf32>
    %41 = vector.shape_cast %37 : vector<16x8xf32> to vector<1x16x8xf32>
    %42 = vector.shape_cast %38 : vector<16x8xf32> to vector<1x16x8xf32>
    %43 = vector.shape_cast %39 : vector<16x8xf32> to vector<1x16x8xf32>
    %44 = vector.shape_cast %40 : vector<16x8xf32> to vector<1x16x8xf32>
    %45 = tpu.concatenate %41, %42, %43, %44 in 0 : vector<1x16x8xf32>, vector<1x16x8xf32>, vector<1x16x8xf32>, vector<1x16x8xf32> -> vector<4x16x8xf32>
    %46 = vector.extract_strided_slice %27 {offsets = [0, 64], sizes = [16, 8], strides = [1, 1]} : vector<16x96xf32> to vector<16x8xf32>
    %47 = vector.extract_strided_slice %27 {offsets = [0, 72], sizes = [16, 8], strides = [1, 1]} : vector<16x96xf32> to vector<16x8xf32>
    %48 = vector.extract_strided_slice %27 {offsets = [0, 80], sizes = [16, 8], strides = [1, 1]} : vector<16x96xf32> to vector<16x8xf32>
    %49 = vector.extract_strided_slice %27 {offsets = [0, 88], sizes = [16, 8], strides = [1, 1]} : vector<16x96xf32> to vector<16x8xf32>
    %50 = vector.shape_cast %46 : vector<16x8xf32> to vector<1x16x8xf32>
    %51 = vector.shape_cast %47 : vector<16x8xf32> to vector<1x16x8xf32>
    %52 = vector.shape_cast %48 : vector<16x8xf32> to vector<1x16x8xf32>
    %53 = vector.shape_cast %49 : vector<16x8xf32> to vector<1x16x8xf32>
    %54 = tpu.concatenate %50, %51, %52, %53 in 0 : vector<1x16x8xf32>, vector<1x16x8xf32>, vector<1x16x8xf32>, vector<1x16x8xf32> -> vector<4x16x8xf32>
    "tpu.trace_start"() <{level = 10 : i32, message = "hqd,hkd->hqk"}> : () -> ()
    %cst_13 = arith.constant dense<0.000000e+00> : vector<4x16x16xf32>
    %55 = tpu.matmul %36, %45, %cst_13 {dimension_numbers = #tpu.dot_dimension_numbers<[2], [2], [1], [1], [0, 0, 0, 1, 1, 1], [0], [0]>} : vector<4x16x8xf32>, vector<4x16x8xf32>, vector<4x16x16xf32> -> vector<4x16x16xf32>
    "tpu.trace_stop"() : () -> ()
    %cst_14 = arith.constant 0.353553385 : f32
    %56 = vector.broadcast %cst_14 : f32 to vector<4x16x16xf32>
    %57 = arith.mulf %55, %56 : vector<4x16x16xf32>
    %cst_15 = arith.constant dense<0xFF800000> : vector<4x16xf32>
    %58 = vector.multi_reduction <maximumf>, %57, %cst_15 [2] : vector<4x16x16xf32> to vector<4x16xf32>
    %59 = vector.shape_cast %58 : vector<4x16xf32> to vector<4x16x1xf32>
    %60 = vector.broadcast %59 : vector<4x16x1xf32> to vector<4x16x16xf32>
    %61 = arith.subf %57, %60 : vector<4x16x16xf32>
    %62 = math.exp %61 : vector<4x16x16xf32>
    %cst_16 = arith.constant dense<0.000000e+00> : vector<4x16xf32>
    %63 = vector.multi_reduction <add>, %62, %cst_16 [2] : vector<4x16x16xf32> to vector<4x16xf32>
    %64 = vector.shape_cast %63 : vector<4x16xf32> to vector<4x16x1xf32>
    %65 = tpu.reciprocal %64 {approx = true} : vector<4x16x1xf32> -> vector<4x16x1xf32>
    %66 = vector.broadcast %65 : vector<4x16x1xf32> to vector<4x16x16xf32>
    %67 = arith.mulf %62, %66 : vector<4x16x16xf32>
    "tpu.trace_start"() <{level = 10 : i32, message = "hqk,hkd->hqd"}> : () -> ()
    %cst_17 = arith.constant dense<0.000000e+00> : vector<4x16x8xf32>
    %68 = tpu.matmul %67, %54, %cst_17 {dimension_numbers = #tpu.dot_dimension_numbers<[2], [1], [1], [2], [0, 0, 0, 1, 1, 2], [0], [0]>} : vector<4x16x16xf32>, vector<4x16x8xf32>, vector<4x16x8xf32> -> vector<4x16x8xf32>
    "tpu.trace_stop"() : () -> ()
    %c0_18 = arith.constant 0 : index
    %c0_19 = arith.constant 0 : index
    %c0_20 = arith.constant 0 : index
    %69 = vector.load %arg5[%c0_18, %c0_19, %c0_20] : memref<4x8x32xf32, #tpu.memory_space<vmem>>, vector<4x8x32xf32>
    "tpu.trace_start"() <{level = 10 : i32, message = "hqe,hed->hqd"}> : () -> ()
    %cst_21 = arith.constant dense<0.000000e+00> : vector<4x16x32xf32>
    %70 = tpu.matmul %68, %69, %cst_21 {dimension_numbers = #tpu.dot_dimension_numbers<[2], [1], [1], [2], [0, 0, 0, 1, 1, 2], [0], [0]>} : vector<4x16x8xf32>, vector<4x8x32xf32>, vector<4x16x32xf32> -> vector<4x16x32xf32>
    "tpu.trace_stop"() : () -> ()
    %cst_22 = arith.constant dense<0.000000e+00> : vector<16x32xf32>
    %71 = vector.multi_reduction <add>, %70, %cst_22 [0] : vector<4x16x32xf32> to vector<16x32xf32>
    %c0_23 = arith.constant 0 : index
    %c0_24 = arith.constant 0 : index
    %72 = vector.load %arg6[%c0_23, %c0_24] : memref<1x32xf32, #tpu.memory_space<vmem>>, vector<1x32xf32>
    %73 = vector.broadcast %72 : vector<1x32xf32> to vector<16x32xf32>
    %74 = arith.addf %71, %73 : vector<16x32xf32>
    %c0_25 = arith.constant 0 : index
    %c0_26 = arith.constant 0 : index
    %c0_27 = arith.constant 0 : index
    %75 = vector.load %arg7[%c0_25, %c0_26, %c0_27] : memref<1x16x32xf32, #tpu.memory_space<vmem>>, vector<1x16x32xf32>
    %76 = vector.shape_cast %75 : vector<1x16x32xf32> to vector<16x32xf32>
    %77 = vector.shape_cast %74 : vector<16x32xf32> to vector<1x16x32xf32>
    tpu.vector_store %arg7[%c0_25, %c0_26, %c0_27], %77 {strides = array<i32>} : memref<1x16x32xf32, #tpu.memory_space<vmem>>, vector<1x16x32xf32>,
    return
  }
  func.func @transform_0(%arg0: i32) -> (i32, i32, i32) {
    %c0_i32 = arith.constant 0 : i32
    %c0_i32_0 = arith.constant 0 : i32
    %c0_i32_1 = arith.constant 0 : i32
    return %arg0, %c0_i32, %c0_i32_0 : i32, i32, i32
  }
  func.func @transform_1(%arg0: i32) -> (i32, i32) {
    %c0_i32 = arith.constant 0 : i32
    %c0_i32_0 = arith.constant 0 : i32
    %c0_i32_1 = arith.constant 0 : i32
    return %c0_i32, %c0_i32_0 : i32, i32
  }
  func.func @transform_2(%arg0: i32) -> (i32, i32) {
    %c0_i32 = arith.constant 0 : i32
    %c0_i32_0 = arith.constant 0 : i32
    %c0_i32_1 = arith.constant 0 : i32
    return %c0_i32, %c0_i32_0 : i32, i32
  }
  func.func @transform_3(%arg0: i32) -> (i32, i32) {
    %c0_i32 = arith.constant 0 : i32
    %c0_i32_0 = arith.constant 0 : i32
    %c0_i32_1 = arith.constant 0 : i32
    return %c0_i32, %c0_i32_0 : i32, i32
  }
  func.func @transform_4(%arg0: i32) -> (i32, i32, i32) {
    %c0_i32 = arith.constant 0 : i32
    %c0_i32_0 = arith.constant 0 : i32
    %c0_i32_1 = arith.constant 0 : i32
    %c0_i32_2 = arith.constant 0 : i32
    return %c0_i32, %c0_i32_0, %c0_i32_1 : i32, i32, i32
  }
  func.func @transform_5(%arg0: i32) -> (i32, i32) {
    %c0_i32 = arith.constant 0 : i32
    %c0_i32_0 = arith.constant 0 : i32
    %c0_i32_1 = arith.constant 0 : i32
    return %c0_i32, %c0_i32_0 : i32, i32
  }
  func.func @transform_6(%arg0: i32) -> (i32, i32, i32) {
    %c0_i32 = arith.constant 0 : i32
    %c0_i32_0 = arith.constant 0 : i32
    %c0_i32_1 = arith.constant 0 : i32
    return %arg0, %c0_i32, %c0_i32_0 : i32, i32, i32
  }
}

</mosaic_0001>

<bundles_post_ra>
// kernel: tpu_custom_call.1
= control target key start
LH: loop header
LB: loop body
LE: loop exit
PB: predicated region body
PF: predicated region fallthrough
CT: control target
= control target key end

     0   :  { %11 = vsyncpa [#allocation3], 0  ;;  %s2555_s0 = inlined_call_operand.hbm [shape: f32[2,16,32], index: 0, kind: input, shape index: {}]   ;;  %s2556_s1 = inlined_call_operand.vmem [shape: f32[1,32], index: 1, kind: input, shape index: {}]   ;;  %s2557_s2 = inlined_call_operand.vmem [shape: f32[1,32], index: 2, kind: input, shape index: {}]   ;;  %s2558_s3 = inlined_call_operand.hbm [shape: f32[32,96], index: 3, kind: input, shape index: {}]   ;;  %s2559_s4 = inlined_call_operand.hbm [shape: f32[4,8,32], index: 4, kind: input, shape index: {}]   ;;  %s2560_s5 = inlined_call_operand.vmem [shape: f32[1,32], index: 5, kind: input, shape index: {}]   ;;  %s2561_s6 = inlined_call_operand.hbm [shape: f32[2,16,32], index: 6, kind: output, shape index: {}]  }
   0x1   :  { %13 = vsyncpa [#allocation3 + $0x1], 0 }
   0x2   :  { %14 = vsyncpa [#allocation6], 0 }
   0x3   :  { %15 = vsyncpa [#allocation4], 0 }
   0x4   :  { %17 = vsyncpa [#allocation4 + $0x1], 0  ;;  %s2203_s21 = smov 0   ;;  %s2205_s22 = smov 0  }
   0x5   :  { %s2207_s23 = smov 0   ;;  %s2209_s24 = smov 0  }
   0x6 LB: > { %s2224_s25 = sadd.s32 4294967295, %s2153_s24   ;;  %s1699_s26 = sadd.s32 4294967294, %s2153_s24   ;;  %s2153_s24 = sphi %s2209_s24, %s2586_s24   ;;  %s2149_s23 = sphi %s2207_s23, %s2585_s23   ;;  %s2145_s22 = sphi %s2205_s22, %s2584_s22   ;;  %s2141_s21 = sphi %s2203_s21, %s2583_s21  }
   0x7   : > { %p43_p0 = scmp.ne.s32.totalorder %s2145_s22, %s2141_s21  ;;  %p2562_p1 = scmp.eq.s32.totalorder %s2224_s25, 0 }
   0x8   : > { %p172_p2 = scmp.eq.s32.totalorder %s2224_s25, 1  ;;  %p178_p3 = scmp.eq.s32.totalorder %s1699_s26, 1 }
   0x9   : > { %p2233_p4 = por %p2562_p1, %p43_p0  ;;  %p1700_p5 = scmp.ge.s32.totalorder %s2153_s24, 1 }
   0xa   : > { %p2238_p6 = por %p178_p3, %p43_p0  ;;  %p185_p7 = scmp.lt.s32.totalorder %s2153_s24, 3 }
   0xb   : > { %s2568_s27 = scalar_select %p2233_p4, 1, 0 }
   0xc   : > { %s2569_s28 = scalar_select %p2238_p6, 1, 0 }
   0xd   : > { %p2243_p8 = pnand %p1700_p5, %p185_p7  ;;  %s2155_s30 = smov [#allocation5]  }
   0xe   : > { %s203_s7 = sshll.u32 %s2155_s30, 4  ;;  %s2156_s9 = smov [#allocation7]   ;;  %s204_s7 = int_to_ptr.vmem [resolvable:$true] %s203_s7 }
   0xf   : > { %s2570_s29 = scalar_select %p2243_p8, 1, 0 }
  0x10   : > { %p1905_p9 = pneg %p2243_p8  ;;  %s216_s10 = sshll.u32 %s2156_s9, 4  ;;  %s217_s10 = int_to_ptr.vmem [resolvable:$true] %s216_s10 }
  0x11   : > { %s2016_s11 = scalar_lea.vmem %s204_s7, 512  ;;  %p2024_p5 = scmp.lt.s32.totalorder %s204_s7, %s204_s7 }
  0x12   : > { %p2252_p11 = pnand %p1905_p9, %p2562_p1  ;;  %p2017_p13 = scmp.ne.s32.totalorder %s204_s7, %s2016_s11 }
  0x13   : > { %p2025_p7 = scmp.lt.s32.totalorder %s2016_s11, %s2016_s11 }
  0x14   : > { %p2007_p12 = pneg %p2252_p11 }
  0x15   : > { %p2026_p10 = por %p2025_p7, %p2024_p5 }
  0x16   : > { %p2019_p0 = pnand %p2017_p13, %p2007_p12 }
  0x18   : > { %p2020_p3 = pneg %p2019_p0 }
  0x1a   : > { %p2027_p9 = pnand %p2026_p10, %p2020_p3 }
  0x1c   : > { %2030 = shalt.err (!%p2027_p9)
}
  0x1d   : > { %s2563_s12 = smov 128   ;;  %s2564_s13 = smov 8  }
  0x1e   : > { %1908 = dma.hbm_to_vmem [thread:$0]  (!%p2252_p11), %s2558_s3, 512, %s204_s7, [#allocation6], %s2563_s12, %s2563_s12, %s2564_s13  }
  0x1f   : > { %s2042_s16 = scalar_lea.vmem %s217_s10, 512  ;;  %p2050_p10 = scmp.lt.s32.totalorder %s217_s10, %s217_s10 }
  0x20   : > { %p2043_p13 = scmp.ne.s32.totalorder %s217_s10, %s2042_s16  ;;  %p2051_p3 = scmp.lt.s32.totalorder %s2042_s16, %s2042_s16 }
  0x22   : > { %p2045_p0 = pnand %p2043_p13, %p2007_p12  ;;  %p2052_p7 = por %p2051_p3, %p2050_p10 }
  0x24   : > { %p2046_p5 = pneg %p2045_p0 }
  0x26   : > { %p2053_p9 = pnand %p2052_p7, %p2046_p5 }
  0x28   : > { %2056 = shalt.err (!%p2053_p9)
}
  0x29   : > { %1911 = dma.hbm_to_vmem [thread:$0]  (!%p2252_p11), %s2559_s4, 512, %s217_s10, [#allocation6], %s2563_s12, %s2563_s12, %s2564_s13  }
  0x2a   : > { %s2281_s19 = sadd.s32 1, %s2153_s24   ;;  %s30_s20 = sadd.s32 1, %s2149_s23 }
  0x2b   : > { %s27_s26 = ssub.s32 %s2153_s24, %s2281_s19  ;;  %p37_p12 = scmp.ne.s32.totalorder %s2149_s23, %s2145_s22 }
  0x2c   : > { %p28_p13 = scmp.eq.s32.totalorder %s27_s26, 0  ;;  %p38_p0 = scmp.eq.s32.totalorder %s2153_s24, 0 }
  0x2d   : > { %p2291_p5 = por %p172_p2, %p37_p12  ;;  %p1922_p10 = scmp.lt.s32.totalorder %s2153_s24, 2 }
  0x2e   : > { %s2297_s7 = scalar_select %p28_p13, %s2149_s23, %s30_s20  }
  0x2f   : > { %s2572_s30 = scalar_select %p2291_p5, 1, 0 }
  0x30   : > { %p39_p3 = por %p38_p0, %p37_p12  ;;  %s233_s8 = sand.u32 1, %s2149_s23  }
  0x31   : > { %s1704_s9 = sshll.u32 %s233_s8, 4  ;;  %s1754_s10 = sshll.u32 %s2153_s24, 8 }
  0x32   : > { %s2304_s15 = scalar_lea.hbm %s2555_s0, %s1754_s10  ;;  %s237_s16 = scalar_lea.vmem [#allocation2], %s1704_s9 }
  0x33   : > { %s244_s17 = sshll.u32 %s237_s16, 4  ;;  %p2308_p2 = pnand %p1922_p10, %p39_p3  ;;  %s2306_s17 = int_to_ptr.vmem [resolvable:$true] %s244_s17 }
  0x34   : > { %s2312_s20 = scalar_lea.sflag [#allocation3], %s233_s8  ;;  %s2057_s26 = scalar_lea.hbm %s2304_s15, 256 }
  0x35   : > { %p2058_p11 = scmp.ne.s32.totalorder %s2304_s15, %s2057_s26  ;;  %p2059_p7 = pneg %p2308_p2 }
  0x36   : > { %s2062_s9 = scalar_lea.hbm %s2555_s0, 512  ;;  %p2063_p13 = scmp.lt.s32.totalorder %s2304_s15, %s2555_s0 }
  0x37   : > { %p2060_p9 = pnand %p2059_p7, %p2058_p11  ;;  %p2064_p0 = scmp.lt.s32.totalorder %s2062_s9, %s2057_s26 }
  0x39   : > { %p2061_p12 = pneg %p2060_p9  ;;  %p2065_p10 = por %p2064_p0, %p2063_p13 }
  0x3b   : > { %p2066_p3 = pnand %p2065_p10, %p2061_p12 }
  0x3d   : > { %2069 = shalt.err (!%p2066_p3)
}
  0x3e   : > { %s2070_s8 = scalar_lea.vmem %s2306_s17, 256  ;;  %s2159_s12 = smov [#allocation2]  }
  0x3f   : > { %p2071_p1 = scmp.ne.s32.totalorder %s2306_s17, %s2070_s8  ;;  %s2075_s13 = sshll.u32 %s2159_s12, 4  ;;  %s2076_s13 = int_to_ptr.vmem [resolvable:$false] %s2075_s13 }
  0x40   : > { %s2077_s10 = scalar_lea.vmem %s2076_s13, 512  ;;  %p2078_p9 = scmp.lt.s32.totalorder %s2306_s17, %s2076_s13 }
  0x41   : > { %p2073_p6 = pnand %p2071_p1, %p2059_p7  ;;  %p2079_p5 = scmp.lt.s32.totalorder %s2077_s10, %s2070_s8 }
  0x43   : > { %p2074_p11 = pneg %p2073_p6  ;;  %p2080_p4 = por %p2079_p5, %p2078_p9 }
  0x45   : > { %p2081_p8 = pnand %p2080_p4, %p2074_p11 }
  0x47   : > { %2084 = shalt.err (!%p2081_p8)
}
  0x48   : > { %s2574_s26 = smov 8   ;;  %s2575_s11 = smov 128  }
  0x49   : > { %1915 = dma.hbm_to_vmem [thread:$0]  (!%p2308_p2), %s2304_s15, 256, %s2306_s17, %s2312_s20, %s2575_s11, %s2575_s11, %s2574_s26  }
  0x4a   : > { %p2576_p1 = scmp.ne.s32.totalorder %s2570_s29, 0 }
  0x4b   : > { %s2339_s12 = sand.u32 (!%p2576_p1), 1, %s2145_s22   ;;  %p2577_p4 = scmp.ne.s32.totalorder (!%p2576_p1), %s2568_s27, 0 }
  0x4c   : > { %256 = sbr.rel (%p2576_p1) target bundleno = 1761 (0x6e1), region = 44  ;;  %s1708_s13 = sshll.u32 (!%p2576_p1), %s2339_s12, 4 }
  0x4d   : > { %s259_s9 = scalar_lea.sflag (!%p2576_p1), [#allocation3], %s2339_s12  ;;  %s262_s18 = scalar_lea.vmem (!%p2576_p1), [#allocation2], %s1708_s13 }
  0x51   : > { %2128 = dma.done.wait (%p2577_p4), %s259_s9, 256  }
  0x52   : > { %2130 = vsyncadd (%p2577_p4), %s259_s9, 4294967040  ;;  %p2578_p6 = scmp.eq.s32.totalorder %s2224_s25, 0 }
  0x54   : > { %2132 = dma.done.wait (%p2578_p6), [#allocation6], 1024   ;;  %p2579_p8 = pmov %p2578_p6 }
  0x55   : > { %vm303_vm0 = vcmask 261120   ;;  %v299_v0 = vld [vmem:[%s262_s18] sm:$0xff]  ;;  %v300_v1 = vld [vmem:[%s262_s18 + $0x8] sm:$0xff]  ;;  %vm450_vm1 = vcmask 64512   ;;  %s2160_s20 = smov 112   ;;  %s2161_s14 = smov 120  }
  0x56   : > { %2134 = vsyncadd (%p2579_p8), [#allocation6], 4294966272  ;;  %v304_v2 = vsel %vm303_vm0, %v299_v0, 0.0  ;;  %v307_v3 = vsel %vm303_vm0, %v300_v1, 0.0  ;;  %v350_v14 = vld [vmem:[#allocation5 + $0x18] sm:$0xff]  ;;  %v349_v15 = vld [vmem:[#allocation5 + $0x10] sm:$0xff] }
  0x57   : > { %305 = vadd.xlane.f32.xlu0 %v304_v2  ;;  %1806 = vmatprep.subr.mxu0 %v350_v14  ;;  %v348_v16 = vld [vmem:[#allocation5 + $0x8] sm:$0xff]  ;;  %v347_v17 = vld [vmem:[#allocation5] sm:$0xff]  ;;  %s2162_s16 = smov 96   ;;  %s2163_s8 = smov 104   ;;  %vm803_vm2 = vcmask 130048  }
  0x58   : > { %1807 = vmatpush3.msra.mxu0 %v350_v14  ;;  %v1712_v25 = vld [vmem:[%s2556_s1] ss:$0 sm:$0xff]  ;;  %s2164_s10 = smov 64   ;;  %s1755_s9 = sshll.u32 %s2224_s25, 8 }
  0x59   : > { %1808 = vmatprep.subr.mxu0 %v349_v15  ;;  %v1713_v27 = vld [vmem:[%s2557_s2] ss:$0 sm:$0xff]  ;;  %s298_s18 = scalar_lea.vmem [#allocation8], %s1708_s13  ;;  %s2508_s17 = scalar_lea.hbm %s2561_s6, %s1755_s9 }
  0x5a   : > { %1809 = vmatpush3.msra.mxu0 %v349_v15  ;;  %s1607_s27 = sshll.u32 %s298_s18, 4  ;;  %s1594_s25 = scalar_lea.sflag [#allocation4], %s2339_s12  ;;  %s2510_s27 = int_to_ptr.vmem [resolvable:$true] %s1607_s27 }
  0x5b   : > { %308 = vadd.xlane.f32.xlu0 %v307_v3  ;;  %1810 = vmatprep.subr.mxu0 %v348_v16  ;;  %s2085_s13 = scalar_lea.vmem %s2510_s27, 256  ;;  %p2580_p2 = scmp.ne.s32.totalorder %s2572_s30, 0 }
  0x5c   : > { %1811 = vmatpush3.msra.mxu0 %v348_v16  ;;  %p2086_p5 = scmp.ne.s32.totalorder %s2510_s27, %s2085_s13 }
  0x5d   : > { %1812 = vmatprep.subr.mxu0 %v347_v17 }
  0x5e   : > { %1813 = vmatpush3.msra.mxu0 %v347_v17  ;;  %p2087_p7 = pnand %p2086_p5, %p2580_p2 }
  0x60   : > { %p2088_p12 = pneg %p2087_p7 }
  0xe0   : > { %v306_v4 = vpop.xlane.xlu0 %305 }
  0xe1   : > { %v311_v5 = vmul.f32 0.03125, %v306_v4 }
  0xe3   : > { %v313_v6 = vsub.f32 %v299_v0, %v311_v5 }
  0xe4   : > { %v309_v7 = vpop.xlane.xlu0 %308 }
  0xe5   : > { %v312_v8 = vmul.f32 0.03125, %v309_v7  ;;  %v315_v9 = vmul.f32 %v313_v6, %v313_v6 }
  0xe7   : > { %v314_v10 = vsub.f32 %v300_v1, %v312_v8  ;;  %v317_v11 = vsel %vm303_vm0, %v315_v9, 0.0 }
  0xe8   : > { %318 = vadd.xlane.f32.xlu1 %v317_v11 }
  0xe9   : > { %v316_v12 = vmul.f32 %v314_v10, %v314_v10 }
  0xeb   : > { %v320_v13 = vsel %vm303_vm0, %v316_v12, 0.0 }
  0xec   : > { %321 = vadd.xlane.f32.xlu1 %v320_v13 }
 0x171   : > { %v319_v18 = vpop.xlane.xlu1 %318 }
 0x172   : > { %v323_v19 = vmul.f32 0.03125, %v319_v18 }
 0x174   : > { %v325_v20 = vadd.f32 1e-05, %v323_v19 }
 0x175   : > { %v322_v21 = vpop.xlane.xlu1 %321 }
 0x176   : > { %1969 = vrsqrt.f32 %v325_v20  ;;  %v324_v22 = vmul.f32 0.03125, %v322_v21 }
 0x178   : > { %v326_v23 = vadd.f32 1e-05, %v324_v22 }
 0x17a   : > { %1971 = vrsqrt.f32 %v326_v23 }
 0x183   : > { %v1970_v24 = vpop.eup %1969 }
 0x184   : > { %v329_v26 = vmul.f32 %v1970_v24, %v313_v6 }
 0x186   : > { %v337_v28 = vmul.f32 %v1712_v25, %v329_v26 }
 0x187   : > { %v1972_v29 = vpop.eup %1971 }
 0x188   : > { %v330_v30 = vmul.f32 %v1972_v29, %v314_v10  ;;  %v345_v31 = vadd.f32 %v1713_v27, %v337_v28 }
 0x18a   : > { %v338_v32 = vmul.f32 %v1712_v25, %v330_v30  ;;  %1814 = vmatprep.mubr.msk.f32.mxu0 %vm303_vm0, %v345_v31 }
 0x18c   : > { %v346_v33 = vadd.f32 %v1713_v27, %v338_v32 }
 0x18e   : > { %1815 = vmatmul.mubr.msk.f32.vlgmr.msra.gmra.mxu0 %vm303_vm0, %v346_v33 }
 0x24e   : > { %v2365_v34 = vpop.f32.mrf.mxu0 }
 0x24f   : > { %440 = vrot.lane.b32.xlu1 %v2365_v34, %s2160_s20  ;;  %436 = vrot.lane.b32.xlu0 %v2365_v34, %s2161_s14 }
 0x250   : > { %v2369_v35 = vpop.f32.mrf.mxu0 }
 0x251   : > { %1821 = vmatprep.mubr.msk.f32.mxu1 %vm450_vm1, %v2369_v35 }
 0x253   : > { %438 = vrot.lane.b32.xlu0 %v2369_v35, %s2160_s20  ;;  %434 = vrot.lane.b32.xlu1 %v2369_v35, %s2161_s14  ;;  %s2165_s20 = smov [#allocation8]  }
 0x254   : > { %s2089_s14 = sshll.u32 %s2165_s20, 4  ;;  %s2090_s14 = int_to_ptr.vmem [resolvable:$false] %s2089_s14 }
 0x255   : > { %p2092_p13 = scmp.lt.s32.totalorder %s2510_s27, %s2090_s14 }
 0x257   : > { %448 = vrot.lane.b32.xlu0 %v2365_v34, %s2162_s16  ;;  %444 = vrot.lane.b32.xlu1 %v2365_v34, %s2163_s8 }
 0x25b   : > { %446 = vrot.lane.b32.xlu0 %v2369_v35, %s2162_s16  ;;  %442 = vrot.lane.b32.xlu1 %v2369_v35, %s2163_s8 }
 0x2c1   : > { %v2379_v36 = vpop.permute.xlu1 %440  ;;  %v2381_v37 = vpop.permute.xlu0 %436 }
 0x2c2   : > { %623 = vrot.lane.b32.xlu0 %v2379_v36, %s2162_s16  ;;  %536 = vrot.lane.b32.xlu1 %v2381_v37, %s2162_s16 }
 0x2c5   : > { %v2385_v38 = vpop.permute.xlu0 %438  ;;  %v2387_v39 = vpop.permute.xlu1 %434 }
 0x2c6   : > { %621 = vrot.lane.b32.xlu0 %v2385_v38, %s2162_s16  ;;  %1828 = vmatprep.mubr.msk.f32.mxu0 %vm450_vm1, %v2387_v39 }
 0x2c7   : > { %534 = vrot.lane.b32.xlu1 %v2387_v39, %s2162_s16 }
 0x2c9   : > { %v449_v40 = vpop.permute.xlu0 %448  ;;  %v2393_v41 = vpop.permute.xlu1 %444 }
 0x2ca   : > { %1817 = vmatprep.subr.msk.mxu1 %vm450_vm1, %v449_v40 }
 0x2cb   : > { %710 = vrot.lane.b32.xlu1 %v2393_v41, %s2162_s16  ;;  %1818 = vmatpush3.xpose.msk.msra.mxu1 %vm450_vm1, %v449_v40 }
 0x2cd   : > { %v447_v42 = vpop.permute.xlu0 %446  ;;  %v2398_v43 = vpop.permute.xlu1 %442 }
 0x2ce   : > { %1819 = vmatprep.subr.msk.mxu1 %vm450_vm1, %v447_v42 }
 0x2cf   : > { %708 = vrot.lane.b32.xlu1 %v2398_v43, %s2162_s16  ;;  %1820 = vmatpush3.xpose.msk.msra.mxu1 %vm450_vm1, %v447_v42  ;;  %s2091_s16 = scalar_lea.vmem %s2090_s14, 512 }
 0x2d0   : > { %p2093_p0 = scmp.lt.s32.totalorder %s2091_s16, %s2085_s13 }
 0x2d2   : > { %1822 = vmatmul.mubr.msk.f32.vlgmr.msra.gmra.mxu1 %vm450_vm1, %v2365_v34  ;;  %p2094_p10 = por %p2093_p0, %p2092_p13 }
 0x2d3   : > { %1835 = vmatprep.mubr.msk.f32.mxu1 %vm450_vm1, %v2385_v38 }
 0x2d4   : > { %p2095_p3 = pnand %p2094_p10, %p2088_p12 }
 0x334   : > { %v624_v44 = vpop.permute.xlu0 %623  ;;  %v537_v45 = vpop.permute.xlu1 %536 }
 0x335   : > { %1824 = vmatprep.subr.msk.mxu0 %vm450_vm1, %v537_v45  ;;  %1831 = vmatprep.subr.msk.mxu1 %vm450_vm1, %v624_v44 }
 0x336   : > { %1825 = vmatpush3.xpose.msk.msra.mxu0 %vm450_vm1, %v537_v45  ;;  %1832 = vmatpush3.xpose.msk.msra.mxu1 %vm450_vm1, %v624_v44 }
 0x338   : > { %v622_v46 = vpop.permute.xlu0 %621 }
 0x339   : > { %v535_v47 = vpop.permute.xlu1 %534  ;;  %1833 = vmatprep.subr.msk.mxu1 %vm450_vm1, %v622_v46 }
 0x33a   : > { %1826 = vmatprep.subr.msk.mxu0 %vm450_vm1, %v535_v47  ;;  %1834 = vmatpush3.xpose.msk.msra.mxu1 %vm450_vm1, %v622_v46 }
 0x33b   : > { %1827 = vmatpush3.xpose.msk.msra.mxu0 %vm450_vm1, %v535_v47 }
 0x33d   : > { %v711_v48 = vpop.permute.xlu1 %710  ;;  %1836 = vmatmul.mubr.msk.f32.vlgmr.msra.gmra.mxu1 %vm450_vm1, %v2379_v36 }
 0x33e   : > { %1829 = vmatmul.mubr.msk.f32.vlgmr.msra.gmra.mxu0 %vm450_vm1, %v2381_v37  ;;  %1838 = vmatprep.subr.msk.mxu0 %vm450_vm1, %v711_v48 }
 0x33f   : > { %1839 = vmatpush3.xpose.msk.msra.mxu0 %vm450_vm1, %v711_v48  ;;  %1842 = vmatprep.mubr.msk.f32.mxu0 %vm450_vm1, %v2398_v43 }
 0x341   : > { %v709_v49 = vpop.permute.xlu1 %708 }
 0x342   : > { %1840 = vmatprep.subr.msk.mxu0 %vm450_vm1, %v709_v49 }
 0x343   : > { %1841 = vmatpush3.xpose.msk.msra.mxu0 %vm450_vm1, %v709_v49 }
 0x346   : > { %1843 = vmatmul.mubr.msk.f32.vlgmr.msra.gmra.mxu0 %vm450_vm1, %v2393_v41 }
 0x392   : > { %v1823_v50 = vpop.f32.mrf.mxu1 }
 0x393   : > { %v796_v51 = vmul.f32 0.35355338, %v1823_v50 }
 0x394   : > { %v525_v52 = vpop.f32.mrf.mxu1 }
 0x395   : > { %v795_v53 = vmul.f32 0.35355338, %v525_v52  ;;  %v807_v54 = vsel %vm803_vm2, %v796_v51, -inf }
 0x396   : > { %808 = vmax.xlane.f32.xlu1 %v807_v54 }
 0x397   : > { %v804_v55 = vsel %vm803_vm2, %v795_v53, -inf }
 0x398   : > { %805 = vmax.xlane.f32.xlu0 %v804_v55 }
 0x3fd   : > { %v1837_v56 = vpop.f32.mrf.mxu1 }
 0x3fe   : > { %v1830_v57 = vpop.f32.mrf.mxu0  ;;  %v800_v58 = vmul.f32 0.35355338, %v1837_v56 }
 0x3ff   : > { %v798_v59 = vmul.f32 0.35355338, %v1830_v57  ;;  %v699_v0 = vpop.f32.mrf.mxu1 }
 0x400   : > { %v612_v60 = vpop.f32.mrf.mxu0  ;;  %v819_v61 = vsel %vm803_vm2, %v800_v58, -inf  ;;  %v799_v1 = vmul.f32 0.35355338, %v699_v0 }
 0x401   : > { %v797_v62 = vmul.f32 0.35355338, %v612_v60  ;;  %v813_v63 = vsel %vm803_vm2, %v798_v59, -inf  ;;  %820 = vmax.xlane.f32.xlu1 %v819_v61 }
 0x402   : > { %814 = vmax.xlane.f32.xlu0 %v813_v63  ;;  %v816_v8 = vsel %vm803_vm2, %v799_v1, -inf }
 0x403   : > { %v810_v2 = vsel %vm803_vm2, %v797_v62, -inf }
 0x406   : > { %v1844_v3 = vpop.f32.mrf.mxu0  ;;  %811 = vmax.xlane.f32.xlu0 %v810_v2 }
 0x407   : > { %v802_v4 = vmul.f32 0.35355338, %v1844_v3 }
 0x408   : > { %v786_v5 = vpop.f32.mrf.mxu0 }
 0x409   : > { %v801_v6 = vmul.f32 0.35355338, %v786_v5  ;;  %v825_v7 = vsel %vm803_vm2, %v802_v4, -inf }
 0x40a   : > { %826 = vmax.xlane.f32.xlu1 %v825_v7  ;;  %817 = vmax.xlane.f32.xlu0 %v816_v8 }
 0x40b   : > { %v822_v9 = vsel %vm803_vm2, %v801_v6, -inf }
 0x40e   : > { %823 = vmax.xlane.f32.xlu0 %v822_v9 }
 0x41b   : > { %892 = vrot.lane.b32.xlu1 %v2369_v35, %s2164_s10 }
 0x41f   : > { %981 = vrot.lane.b32.xlu1 %v2381_v37, %s2164_s10  ;;  %v809_v12 = vpop.xlane.xlu1 %808 }
 0x420   : > { %v829_v13 = vsub.f32 %v796_v51, %v809_v12 }
 0x421   : > { %v806_v10 = vpop.xlane.xlu0 %805 }
 0x422   : > { %v828_v11 = vsub.f32 %v795_v53, %v806_v10  ;;  %v838_v15 = vmul.f32 1.442695, %v829_v13 }
 0x423   : > { %979 = vrot.lane.b32.xlu1 %v2387_v39, %s2164_s10 }
 0x424   : > { %894 = vrot.lane.b32.xlu0 %v2365_v34, %s2164_s10  ;;  %v836_v14 = vmul.f32 1.442695, %v828_v11 }
 0x426   : > { %1973 = vpow2.f32 %v836_v14 }
 0x427   : > { %1066 = vrot.lane.b32.xlu1 %v2385_v38, %s2164_s10  ;;  %1975 = vpow2.f32 %v838_v15 }
 0x428   : > { %1068 = vrot.lane.b32.xlu0 %v2379_v36, %s2164_s10 }
 0x433   : > { %v2447_v16 = vpop.eup %1973 }
 0x434   : > { %v852_v17 = vsel %vm803_vm2, %v2447_v16, 0.0  ;;  %v2451_v18 = vpop.eup %1975 }
 0x435   : > { %v855_v19 = vsel %vm803_vm2, %v2451_v18, 0.0 }
 0x447   : > { %853 = vadd.xlane.f32.xlu0 %v852_v17 }
 0x44b   : > { %856 = vadd.xlane.f32.xlu1 %v855_v19  ;;  %v1241_v19 = vld [vmem:[#allocation7 + $0x8] sm:$0xff] }
 0x48a   : > { %v821_v20 = vpop.xlane.xlu1 %820 }
 0x48b   : > { %v815_v21 = vpop.xlane.xlu0 %814  ;;  %v833_v22 = vsub.f32 %v800_v58, %v821_v20  ;;  %v1242_v20 = vld [vmem:[#allocation7 + $0x10] sm:$0xff] }
 0x48c   : > { %v831_v23 = vsub.f32 %v798_v59, %v815_v21  ;;  %v1243_v21 = vld [vmem:[#allocation7 + $0x18] sm:$0xff] }
 0x48d   : > { %v846_v25 = vmul.f32 1.442695, %v833_v22 }
 0x48e   : > { %v842_v24 = vmul.f32 1.442695, %v831_v23 }
 0x48f   : > { %v812_v26 = vpop.xlane.xlu0 %811 }
 0x490   : > { %1977 = vpow2.f32 %v842_v24  ;;  %v830_v27 = vsub.f32 %v797_v62, %v812_v26 }
 0x491   : > { %1979 = vpow2.f32 %v846_v25 }
 0x492   : > { %v840_v28 = vmul.f32 1.442695, %v830_v27 }
 0x493   : > { %v827_v29 = vpop.xlane.xlu1 %826  ;;  %v818_v30 = vpop.xlane.xlu0 %817 }
 0x494   : > { %1981 = vpow2.f32 %v840_v28  ;;  %v835_v31 = vsub.f32 %v802_v4, %v827_v29  ;;  %v832_v32 = vsub.f32 %v799_v1, %v818_v30 }
 0x496   : > { %v850_v33 = vmul.f32 1.442695, %v835_v31  ;;  %v844_v34 = vmul.f32 1.442695, %v832_v32 }
 0x497   : > { %v893_v35 = vpop.permute.xlu1 %892  ;;  %v824_v36 = vpop.xlane.xlu0 %823 }
 0x498   : > { %1983 = vpow2.f32 %v850_v33  ;;  %v834_v37 = vsub.f32 %v801_v6, %v824_v36 }
 0x499   : > { %1985 = vpow2.f32 %v844_v34 }
 0x49a   : > { %v848_v38 = vmul.f32 1.442695, %v834_v37 }
 0x49b   : > { %v982_v39 = vpop.permute.xlu1 %981  ;;  %v895_v40 = vpop.permute.xlu0 %894 }
 0x49c   : > { %1987 = vpow2.f32 %v848_v38  ;;  %1845 = vmatprep.subr.mxu1 %v895_v40 }
 0x49d   : > { %v2455_v42 = vpop.eup %1977  ;;  %1846 = vmatpush3.msra.mxu1 %v895_v40 }
 0x49e   : > { %1847 = vmatprep.subr.mxu1 %v893_v35  ;;  %v861_v44 = vsel %vm803_vm2, %v2455_v42, 0.0  ;;  %v2459_v45 = vpop.eup %1979 }
 0x49f   : > { %862 = vadd.xlane.f32.xlu1 %v861_v44  ;;  %v980_v46 = vpop.permute.xlu1 %979  ;;  %1848 = vmatpush3.msra.mxu1 %v893_v35  ;;  %v1069_v47 = vpop.permute.xlu0 %1068  ;;  %v867_v49 = vsel %vm803_vm2, %v2459_v45, 0.0 }
 0x4a0   : > { %1852 = vmatprep.subr.mxu1 %v982_v39  ;;  %1859 = vmatprep.subr.mxu0 %v1069_v47 }
 0x4a1   : > { %v1982_v48 = vpop.eup %1981  ;;  %1860 = vmatpush3.msra.mxu0 %v1069_v47 }
 0x4a2   : > { %v858_v50 = vsel %vm803_vm2, %v1982_v48, 0.0 }
 0x4a3   : > { %868 = vadd.xlane.f32.xlu1 %v867_v49  ;;  %v1067_v51 = vpop.permute.xlu1 %1066  ;;  %859 = vadd.xlane.f32.xlu0 %v858_v50  ;;  %v1748_v49 = vld [vmem:[%s2560_s5] ss:$0 sm:$0xff] }
 0x4a4   : > { %1861 = vmatprep.subr.mxu0 %v1067_v51 }
 0x4a5   : > { %v1984_v52 = vpop.eup %1983  ;;  %1862 = vmatpush3.msra.mxu0 %v1067_v51 }
 0x4a6   : > { %v1986_v53 = vpop.eup %1985  ;;  %v873_v54 = vsel %vm803_vm2, %v1984_v52, 0.0 }
 0x4a7   : > { %874 = vadd.xlane.f32.xlu1 %v873_v54  ;;  %v864_v55 = vsel %vm803_vm2, %v1986_v53, 0.0 }
 0x4a8   : > { %865 = vadd.xlane.f32.xlu0 %v864_v55 }
 0x4a9   : > { %v1988_v56 = vpop.eup %1987 }
 0x4aa   : > { %v870_v57 = vsel %vm803_vm2, %v1988_v56, 0.0 }
 0x4ac   : > { %871 = vadd.xlane.f32.xlu0 %v870_v57 }
 0x4b8   : > { %1153 = vrot.lane.b32.xlu1 %v2398_v43, %s2164_s10  ;;  %v1240_v43 = vld [vmem:[#allocation7] sm:$0xff] }
 0x4b9   : > { %1873 = vmatprep.subr.mxu0 %v1240_v43 }
 0x4c2   : > { %1155 = vrot.lane.b32.xlu0 %v2393_v41, %s2164_s10 }
 0x4d0   : > { %v854_v58 = vpop.xlane.xlu0 %853 }
 0x4d1   : > { %1989 = vrcp.f32 %v854_v58 }
 0x4d4   : > { %v857_v59 = vpop.xlane.xlu1 %856 }
 0x4d5   : > { %1991 = vrcp.f32 %v857_v59 }
 0x4de   : > { %v1990_v60 = vpop.eup %1989 }
 0x4df   : > { %v884_v61 = vmul.f32 %v1990_v60, %v2447_v16 }
 0x4e1   : > { %1849 = vmatprep.mubr.msk.f32.mxu1 %vm803_vm2, %v884_v61 }
 0x4e2   : > { %v1992_v62 = vpop.eup %1991 }
 0x4e3   : > { %v885_v63 = vmul.f32 %v1992_v62, %v2451_v18 }
 0x4e5   : > { %1850 = vmatmul.mubr.msk.f32.vlgmr.msra.gmra.mxu1 %vm803_vm2, %v885_v63 }
 0x4e6   : > { %1853 = vmatpush3.msra.mxu1 %v982_v39 }
 0x4e7   : > { %1854 = vmatprep.subr.mxu1 %v980_v46 }
 0x4e8   : > { %1855 = vmatpush3.msra.mxu1 %v980_v46 }
 0x528   : > { %v863_v0 = vpop.xlane.xlu1 %862 }
 0x529   : > { %1993 = vrcp.f32 %v863_v0 }
 0x52c   : > { %v869_v41 = vpop.xlane.xlu1 %868  ;;  %v860_v1 = vpop.xlane.xlu0 %859 }
 0x52d   : > { %1995 = vrcp.f32 %v860_v1 }
 0x52e   : > { %1997 = vrcp.f32 %v869_v41 }
 0x530   : > { %v875_v3 = vpop.xlane.xlu1 %874 }
 0x531   : > { %v866_v2 = vpop.xlane.xlu0 %865 }
 0x532   : > { %1999 = vrcp.f32 %v866_v2 }
 0x533   : > { %2001 = vrcp.f32 %v875_v3 }
 0x534   : > { %v1154_v12 = vpop.permute.xlu1 %1153 }
 0x535   : > { %v872_v4 = vpop.xlane.xlu0 %871 }
 0x536   : > { %2003 = vrcp.f32 %v872_v4  ;;  %v1994_v6 = vpop.eup %1993 }
 0x537   : > { %v887_v9 = vmul.f32 %v1994_v6, %v2455_v42 }
 0x539   : > { %v1156_v5 = vpop.permute.xlu0 %1155 }
 0x53a   : > { %1866 = vmatprep.subr.mxu1 %v1156_v5  ;;  %v1996_v7 = vpop.eup %1995 }
 0x53b   : > { %v886_v8 = vmul.f32 %v1996_v7, %v1982_v48  ;;  %v1998_v10 = vpop.eup %1997 }
 0x53c   : > { %v889_v14 = vmul.f32 %v1998_v10, %v2459_v45 }
 0x53d   : > { %1856 = vmatprep.mubr.msk.f32.mxu1 %vm803_vm2, %v886_v8 }
 0x53e   : > { %1857 = vmatmul.mubr.msk.f32.vlgmr.msra.gmra.mxu1 %vm803_vm2, %v887_v9 }
 0x53f   : > { %v2000_v11 = vpop.eup %1999  ;;  %1867 = vmatpush3.msra.mxu1 %v1156_v5 }
 0x540   : > { %v888_v13 = vmul.f32 %v2000_v11, %v1986_v53  ;;  %1868 = vmatprep.subr.mxu1 %v1154_v12  ;;  %v2002_v15 = vpop.eup %2001 }
 0x541   : > { %1869 = vmatpush3.msra.mxu1 %v1154_v12  ;;  %v891_v18 = vmul.f32 %v2002_v15, %v1984_v52 }
 0x542   : > { %1863 = vmatprep.mubr.msk.f32.mxu0 %vm803_vm2, %v888_v13  ;;  %1878 = vmatprep.subr.mxu1 %v1241_v19 }
 0x543   : > { %v2004_v16 = vpop.eup %2003  ;;  %1864 = vmatmul.mubr.msk.f32.vlgmr.msra.gmra.mxu0 %vm803_vm2, %v889_v14 }
 0x544   : > { %v890_v17 = vmul.f32 %v2004_v16, %v1988_v56  ;;  %1874 = vmatpush3.msra.mxu0 %v1240_v43 }
 0x545   : > { %1883 = vmatprep.subr.mxu0 %v1242_v20 }
 0x546   : > { %1870 = vmatprep.mubr.msk.f32.mxu1 %vm803_vm2, %v890_v17 }
 0x547   : > { %1871 = vmatmul.mubr.msk.f32.vlgmr.msra.gmra.mxu1 %vm803_vm2, %v891_v18 }
 0x548   : > { %1879 = vmatpush3.msra.mxu1 %v1241_v19 }
 0x549   : > { %1888 = vmatprep.subr.mxu1 %v1243_v21 }
 0x5a5   : > { %v1851_v22 = vpop.f32.mrf.mxu1 }
 0x5a7   : > { %v970_v23 = vpop.f32.mrf.mxu1 }
 0x5a8   : > { %1875 = vmatprep.mubr.msk.f32.mxu0 %vm450_vm1, %v970_v23 }
 0x5a9   : > { %1876 = vmatmul.mubr.msk.f32.vlgmr.msra.gmra.mxu0 %vm450_vm1, %v1851_v22 }
 0x5aa   : > { %1884 = vmatpush3.msra.mxu0 %v1242_v20 }
 0x5fe   : > { %v1858_v24 = vpop.f32.mrf.mxu1 }
 0x600   : > { %v1057_v25 = vpop.f32.mrf.mxu1 }
 0x601   : > { %1880 = vmatprep.mubr.msk.f32.mxu1 %vm450_vm1, %v1057_v25 }
 0x602   : > { %1881 = vmatmul.mubr.msk.f32.vlgmr.msra.gmra.mxu1 %vm450_vm1, %v1858_v24 }
 0x603   : > { %v1865_v26 = vpop.f32.mrf.mxu0  ;;  %1889 = vmatpush3.msra.mxu1 %v1243_v21 }
 0x605   : > { %v1144_v27 = vpop.f32.mrf.mxu0 }
 0x606   : > { %1885 = vmatprep.mubr.msk.f32.mxu0 %vm450_vm1, %v1144_v27 }
 0x607   : > { %v1872_v28 = vpop.f32.mrf.mxu1  ;;  %1886 = vmatmul.mubr.msk.f32.vlgmr.msra.gmra.mxu0 %vm450_vm1, %v1865_v26 }
 0x609   : > { %v1231_v29 = vpop.f32.mrf.mxu1 }
 0x60a   : > { %1890 = vmatprep.mubr.msk.f32.mxu1 %vm450_vm1, %v1231_v29 }
 0x60b   : > { %1891 = vmatmul.mubr.msk.f32.vlgmr.msra.gmra.mxu1 %vm450_vm1, %v1872_v28 }
 0x669   : > { %v1877_v30 = vpop.f32.mrf.mxu0 }
 0x66a   : > { %v1575_v36 = vsel %vm303_vm0, %v1877_v30, 0.0 }
 0x66b   : > { %v1316_v32 = vpop.f32.mrf.mxu0 }
 0x66c   : > { %v1568_v42 = vsel %vm303_vm0, %v1316_v32, 0.0 }
 0x6c2   : > { %v1882_v31 = vpop.f32.mrf.mxu1 }
 0x6c3   : > { %v1576_v34 = vsel %vm303_vm0, %v1882_v31, 0.0 }
 0x6c4   : > { %v1397_v33 = vpop.f32.mrf.mxu1  ;;  %v1577_v39 = vadd.f32 %v1576_v34, %v1575_v36 }
 0x6c5   : > { %v1569_v37 = vsel %vm303_vm0, %v1397_v33, 0.0 }
 0x6c6   : > { %v1570_v45 = vadd.f32 %v1569_v37, %v1568_v42 }
 0x6c7   : > { %v1887_v35 = vpop.f32.mrf.mxu0 }
 0x6c8   : > { %v1578_v38 = vsel %vm303_vm0, %v1887_v35, 0.0 }
 0x6c9   : > { %v1478_v40 = vpop.f32.mrf.mxu0  ;;  %v1579_v46 = vadd.f32 %v1578_v38, %v1577_v39 }
 0x6ca   : > { %v1571_v44 = vsel %vm303_vm0, %v1478_v40, 0.0 }
 0x6cb   : > { %v1892_v47 = vpop.f32.mrf.mxu1  ;;  %v1572_v50 = vadd.f32 %v1571_v44, %v1570_v45 }
 0x6cc   : > { %v1580_v48 = vsel %vm303_vm0, %v1892_v47, 0.0 }
 0x6cd   : > { %v1581_v51 = vadd.f32 %v1580_v48, %v1579_v46  ;;  %v1559_v52 = vpop.f32.mrf.mxu1 }
 0x6ce   : > { %v1573_v53 = vsel %vm303_vm0, %v1559_v52, 0.0 }
 0x6cf   : > { %v1590_v54 = vadd.f32 %v1748_v49, %v1581_v51  ;;  %v1574_v55 = vadd.f32 %v1573_v53, %v1572_v50 }
 0x6d1   : > { %1592 = vst.msk [vmem:[%s298_s18 + $0x8] sm:$0xff] %vm303_vm0, %v1590_v54  ;;  %v1589_v56 = vadd.f32 %v1748_v49, %v1574_v55 }
 0x6d3   : > { %1591 = vst.msk [vmem:[%s298_s18] sm:$0xff] %vm303_vm0, %v1589_v56 }
 0x6d4   : > { %2098 = shalt.err (!%p2095_p3)
}
 0x6d5   : > { %s2099_s8 = scalar_lea.hbm %s2508_s17, 256  ;;  %s2103_s11 = scalar_lea.hbm %s2561_s6, 512 }
 0x6d6   : > { %p2100_p11 = scmp.ne.s32.totalorder %s2508_s17, %s2099_s8  ;;  %p2104_p4 = scmp.lt.s32.totalorder %s2508_s17, %s2561_s6 }
 0x6d7   : > { %p2105_p6 = scmp.lt.s32.totalorder %s2103_s11, %s2099_s8 }
 0x6d8   : > { %p2101_p9 = pnand %p2100_p11, %p2580_p2 }
 0x6d9   : > { %p2106_p8 = por %p2105_p6, %p2104_p4 }
 0x6da   : > { %p2102_p1 = pneg %p2101_p9 }
 0x6dc   : > { %p2107_p5 = pnand %p2106_p8, %p2102_p1 }
 0x6de   : > { %2110 = shalt.err (!%p2107_p5)
}
 0x6df   : > { %s2166_s29 = smov 128   ;;  %s2167_s15 = smov 8  }
 0x6e0   : > { %1903 = dma.vmem_to_hbm [thread:$0]  (%p2580_p2), %s2510_s27, 256, %s2508_s17, %s1594_s25, %s2166_s29, %s2166_s29, %s2167_s15  }
 0x6e1 PF: > { %s1622_s13 = sand.u32 1, %s2141_s21   ;;  %p2581_p7 = scmp.ne.s32.totalorder %s2569_s28, 0 }
 0x6e2   : > { %p2582_p12 = scmp.ge.s32.totalorder %s2153_s24, 2  ;;  %s1623_s20 = scalar_lea.sflag [#allocation4], %s1622_s13 }
 0x6e4   : > { %p1917_p13 = pnand %p2582_p12, %p2581_p7 }
 0x6e6   : > { %p1918_p0 = pneg %p1917_p13 }
 0x6e8   : > { %2136 = dma.done.wait (%p1918_p0), %s1623_s20, 256  }
 0x6e9   : > { %2138 = vsyncadd (%p1918_p0), %s1623_s20, 4294967040  ;;  %p20_p10 = scmp.ge.s32.totalorder %s2281_s19, 4   ;;  %s2583_s21 = smov %s2145_s22 }
 0x6ea   : > { %s2584_s22 = smov %s2149_s23  ;;  %s2585_s23 = smov %s2297_s7 }
 0x6eb   : > { %s2586_s24 = smov %s2281_s19  ;;  %22 = sbr.rel (!%p20_p10) target bundleno = 6 (0x6), region = 97 }
 0x6f0   :  { %1628 = vsyncpa [#allocation3], 1 }
 0x6f1   :  { %1630 = vsyncpa [#allocation3 + $0x1], 1 }
 0x6f2   :  { %1631 = vsyncpa [#allocation6], 1 }
 0x6f3   :  { %1632 = vsyncpa [#allocation4], 1 }
 0x6f4   :  { %1634 = vsyncpa [#allocation4 + $0x1], 1 }

</bundles_post_ra>
